<compile_context>
chip_gen: v7x
topology: tpu7x:2x2x1
jax: 0.10.0
libtpu: 0.0.40
codegen_flags: <defaults>
</compile_context>

<pallas_src>
import functools

import jax
import jax.numpy as jnp
from jax import lax
from jax.experimental import pallas as pl
from jax.experimental.pallas import tpu as pltpu

# Fits v7x's 64 MiB physical VMEM and lifts v5e's 16 MiB scoped default.
_VMEM_LIMIT = 64 * 1024 * 1024


# ----------------------------- linear kernel ------------------------------ #
def _linear_kernel(x_ref, w_ref, b_ref, o_ref):
    # x: (tm, K) f32 (cast to bf16 in-kernel), w: (K, N) bf16 resident,
    # b: (1, N) f32 resident -> o: (tm, N)
    x = x_ref[...].astype(jnp.bfloat16)
    acc = jnp.dot(x, w_ref[...], preferred_element_type=jnp.float32)
    o_ref[...] = (acc + b_ref[...]).astype(o_ref.dtype)


def linear(x, w, b, out_dtype=None, tm=512):
    """y = x @ w + b.  x: (M, K) any float dtype, w: (K, N) bf16, b: (N,) f32."""
    M, K = x.shape
    N = w.shape[1]
    out_dtype = out_dtype if out_dtype is not None else x.dtype
    tm = min(tm, M)                      # row tile (full array when M is small)
    b2 = b.reshape(1, N)
    # TODO(synk): for decode-sized M on v7x, add an N-column "parallel" grid
    # axis so both TensorCores get work even when there is only one row tile.
    return pl.pallas_call(
        _linear_kernel,
        out_shape=jax.ShapeDtypeStruct((M, N), out_dtype),
        grid=(pl.cdiv(M, tm),),
        in_specs=[
            pl.BlockSpec((tm, K), lambda i: (i, 0)),          # pipelined rows
            pl.BlockSpec((K, N), lambda i: (0, 0),            # resident weight,
                         pipeline_mode=pl.Buffered(1)),       #   single buffer
            pl.BlockSpec((1, N), lambda i: (0, 0),            # resident bias
                         pipeline_mode=pl.Buffered(1)),
        ],
        out_specs=pl.BlockSpec((tm, N), lambda i: (i, 0)),
        compiler_params=pltpu.CompilerParams(
            dimension_semantics=("parallel",),
            vmem_limit_bytes=_VMEM_LIMIT),
    )(x, w, b2)


# ------------------- attention kernel (fused out_proj) --------------------- #
def _attn_kernel(q_ref, kv_ref, w_out_ref, b_out_ref, o_ref, attn_sc,
                 *, num_heads):
    # q_ref:   (1, tq, D)   bf16, softmax scale already folded into the weights
    # kv_ref:  (1, Tk, 2D)  bf16, K in cols [0:D), V in cols [D:2D) (one DMA)
    # w_out_ref: (D, D) bf16 resident; b_out_ref: (1, D) f32 resident
    # o_ref:   (1, tq, D)   lane-dense final output (D % 128 == 0)
    # attn_sc: (tq, D) f32 scratch holding the per-head attention outputs
    D = q_ref.shape[2]
    H = num_heads
    Dh = D // H

    q = q_ref[0]                 # (tq, D)  bf16
    kv = kv_ref[0]               # (Tk, 2D) bf16

    for h in range(H):           # unrolled: all heads handled in ONE grid step
        lo = h * Dh
        q_h = q[:, lo:lo + Dh]
        k_h = kv[:, lo:lo + Dh]
        v_h = kv[:, D + lo:D + lo + Dh]
        # QK^T without an explicit transpose: contract the Dh dims directly.
        s = lax.dot_general(q_h, k_h, (((1,), (1,)), ((), ())),
                            preferred_element_type=jnp.float32)   # (tq, Tk)
        m = jnp.max(s, axis=-1, keepdims=True)
        p = jnp.exp(s - m)                                        # f32 softmax
        l = jnp.sum(p, axis=-1, keepdims=True)
        o_h = jnp.dot(p.astype(jnp.bfloat16), v_h,
                      preferred_element_type=jnp.float32)         # (tq, Dh)
        # Normalize the small (tq, Dh) output (EUP reciprocal, not a divide of
        # the (tq, Tk) probs); write into scratch to bound live ranges.
        attn_sc[:, lo:lo + Dh] = o_h * pl.reciprocal(l, approx=True)

    # Fused out_proj: (tq, D) @ (D, D) + b, then one lane-dense store.
    out = jnp.dot(attn_sc[...].astype(jnp.bfloat16), w_out_ref[...],
                  preferred_element_type=jnp.float32) + b_out_ref[...]
    o_ref[0] = out.astype(o_ref.dtype)


def cross_attention_out_proj(q, kv, w_out, b_out, num_heads, out_dtype, tq=256):
    """q: (B, Tq, D) bf16, kv: (B, Tk, 2D) bf16 -> out_proj(attn(q,k,v)): (B, Tq, D)."""
    B, Tq, D = q.shape
    Tk = kv.shape[1]
    tq = min(tq, Tq)
    b2 = b_out.reshape(1, D)
    kern = functools.partial(_attn_kernel, num_heads=num_heads)
    # TODO(synk): for very long encoder sequences, switch to a flash-style
    # online-softmax loop over Tk tiles (extra "arbitrary" grid axis, m/l scratch).
    return pl.pallas_call(
        kern,
        out_shape=jax.ShapeDtypeStruct((B, Tq, D), out_dtype),
        grid=(B, pl.cdiv(Tq, tq)),
        in_specs=[
            pl.BlockSpec((1, tq, D), lambda b, i: (b, i, 0)),       # q tile
            pl.BlockSpec((1, Tk, 2 * D), lambda b, i: (b, 0, 0)),   # packed K|V
            pl.BlockSpec((D, D), lambda b, i: (0, 0),               # resident W_out
                         pipeline_mode=pl.Buffered(1)),
            pl.BlockSpec((1, D), lambda b, i: (0, 0),               # resident b_out
                         pipeline_mode=pl.Buffered(1)),
        ],
        out_specs=pl.BlockSpec((1, tq, D), lambda b, i: (b, i, 0)),
        scratch_shapes=[pltpu.VMEM((tq, D), jnp.float32)],
        compiler_params=pltpu.CompilerParams(
            dimension_semantics=("parallel", "parallel"),
            vmem_limit_bytes=_VMEM_LIMIT),
    )(q, kv, w_out, b2)


# ------------------------------ module glue -------------------------------- #
def init_params(key, d_model):
    """Deterministic synthetic parameters matching the module's shapes (f32)."""
    k1, k2, k3, k4 = jax.random.split(key, 4)
    s = 0.02
    # QKVParallelLinear: out = 3 * d_model (q_size + 2 * kv_size)
    w_qkv = (s * jax.random.normal(k1, (d_model, 3 * d_model))).astype(jnp.float32)
    b_qkv = (s * jax.random.normal(k2, (3 * d_model,))).astype(jnp.float32)
    # RowParallelLinear out_proj: d_model -> d_model
    w_out = (s * jax.random.normal(k3, (d_model, d_model))).astype(jnp.float32)
    b_out = (s * jax.random.normal(k4, (d_model,))).astype(jnp.float32)
    return dict(w_qkv=w_qkv, b_qkv=b_qkv, w_out=w_out, b_out=b_out)


def prepare_params(params, d_model, num_heads):
    """One-time weight transform: split the packed QKV projection, fold the
    softmax scale into the Q columns, store matmul weights as bf16 (biases
    stay f32 -- they are added to the f32 accumulator in-kernel)."""
    D = d_model
    scale = (D // num_heads) ** (-0.5)
    w_qkv, b_qkv = params["w_qkv"], params["b_qkv"]
    # TODO(synk): on v7x the bf16 weights could be stored fp8 + per-column
    # scales (dequantized in the f32 epilogue) for half the weight HBM/VMEM.
    return dict(
        w_q=(w_qkv[:, :D] * scale).astype(jnp.bfloat16),
        b_q=(b_qkv[:D] * scale).astype(jnp.float32),
        w_kv=w_qkv[:, D:].astype(jnp.bfloat16),        # K|V packed adjacently
        b_kv=b_qkv[D:].astype(jnp.float32),
        w_out=params["w_out"].astype(jnp.bfloat16),
        b_out=params["b_out"].astype(jnp.float32),
    )


def bart_cross_attention(decoder_hidden_states, encoder_hidden_states,
                         prepped, num_heads):
    B, Tq, D = decoder_hidden_states.shape
    _, Tk, _ = encoder_hidden_states.shape
    assert D % num_heads == 0 and D % 128 == 0, \
        "d_model must be a multiple of 128 for lane-dense attention blocks"
    out_dtype = decoder_hidden_states.dtype

    # Q projection of decoder tokens only (D output cols, scale pre-folded);
    # activations stay f32 into the kernel (cast to bf16 in-kernel).
    q = linear(decoder_hidden_states.reshape(B * Tq, D),
               prepped["w_q"], prepped["b_q"], out_dtype=jnp.bfloat16)
    # K|V projection of encoder tokens only (2D output cols, packed adjacently).
    kv = linear(encoder_hidden_states.reshape(B * Tk, D),
                prepped["w_kv"], prepped["b_kv"], out_dtype=jnp.bfloat16)

    # Attention + fused out_proj: reads q / packed k|v directly, writes the
    # final (B, Tq, D) output -- no intermediate attention-output HBM round trip.
    return cross_attention_out_proj(q.reshape(B, Tq, D),
                                    kv.reshape(B, Tk, 2 * D),
                                    prepped["w_out"], prepped["b_out"],
                                    num_heads, out_dtype)


# ----------------------------- pure-JAX reference --------------------------- #
def _reference(dec_hs, enc_hs, params, num_heads):
    B, Tq, D = dec_hs.shape
    Tk = enc_hs.shape[1]
    H = num_heads
    Dh = D // H
    qkv_dec = dec_hs @ params["w_qkv"] + params["b_qkv"]
    qkv_enc = enc_hs @ params["w_qkv"] + params["b_qkv"]
    q = qkv_dec[..., :D].reshape(B, Tq, H, Dh).transpose(0, 2, 1, 3)
    k = qkv_enc[..., D:2 * D].reshape(B, Tk, H, Dh).transpose(0, 2, 1, 3)
    v = qkv_enc[..., 2 * D:].reshape(B, Tk, H, Dh).transpose(0, 2, 1, 3)
    s = jnp.einsum("bhqd,bhkd->bhqk", q, k) * (Dh ** -0.5)
    p = jax.nn.softmax(s, axis=-1)
    o = jnp.einsum("bhqk,bhkd->bhqd", p, v)
    o = o.transpose(0, 2, 1, 3).reshape(B, Tq, D)
    return o @ params["w_out"] + params["b_out"]


if __name__ == "__main__":
    key = jax.random.PRNGKey(0)
    B, Tq, Tk = 2, 8, 16
    d_model, num_heads = 128, 4          # head_dim = 32, lane-dense D = 128

    k_p, k_dec, k_enc = jax.random.split(key, 3)
    params = init_params(k_p, d_model)
    prepped = prepare_params(params, d_model, num_heads)
    dec_hs = jax.random.normal(k_dec, (B, Tq, d_model), dtype=jnp.float32)
    enc_hs = jax.random.normal(k_enc, (B, Tk, d_model), dtype=jnp.float32)

    out = bart_cross_attention(dec_hs, enc_hs, prepped, num_heads)
    out = jax.block_until_ready(out)
    assert out.shape == (B, Tq, d_model)
    assert bool(jnp.isfinite(out).all())

    ref = _reference(dec_hs, enc_hs, params, num_heads)
    max_err = float(jnp.max(jnp.abs(out - ref)))
    assert max_err < 2e-2, f"max abs error vs f32 reference: {max_err}"

    print("KERNEL_OK")
</pallas_src>

<mosaic_0001>
module attributes {stable_mosaic.version = 11 : i64} {
  func.func @_linear_kernel(%arg0: i32, %arg1: memref<16x128xf32, #tpu.memory_space<vmem>>, %arg2: memref<128x128xbf16, #tpu.memory_space<vmem>>, %arg3: memref<1x128xf32, #tpu.memory_space<vmem>>, %arg4: memref<16x128xbf16, #tpu.memory_space<vmem>>) attributes {dimension_semantics = [#tpu.dimension_semantics<parallel>], iteration_bounds = array<i64: 1>, scalar_prefetch = 0 : i64, scratch_operands = 0 : i64, tpu.core_type = #tpu.core_type<tc>, window_params = [{transform_indices = @transform_0, window_bounds = array<i64: 16, 128>}, {pipeline_mode = #tpu.pipeline_mode<synchronous>, transform_indices = @transform_1, window_bounds = array<i64: 128, 128>}, {pipeline_mode = #tpu.pipeline_mode<synchronous>, transform_indices = @transform_2, window_bounds = array<i64: 1, 128>}, {transform_indices = @transform_3, window_bounds = array<i64: 16, 128>}]} {
    %c0 = arith.constant 0 : index
    %c0_0 = arith.constant 0 : index
    %0 = vector.load %arg1[%c0, %c0_0] : memref<16x128xf32, #tpu.memory_space<vmem>>, vector<16x128xf32>
    %1 = arith.truncf %0 : vector<16x128xf32> to vector<16x128xbf16>
    %c0_1 = arith.constant 0 : index
    %c0_2 = arith.constant 0 : index
    %2 = vector.load %arg2[%c0_1, %c0_2] : memref<128x128xbf16, #tpu.memory_space<vmem>>, vector<128x128xbf16>
    %cst = arith.constant dense<0.000000e+00> : vector<16x128xf32>
    %3 = tpu.matmul %1, %2, %cst {dimension_numbers = #tpu.dot_dimension_numbers<[1], [0], [0], [1], [0, 0, 1, 1], [], []>} : vector<16x128xbf16>, vector<128x128xbf16>, vector<16x128xf32> -> vector<16x128xf32>
    %c0_3 = arith.constant 0 : index
    %c0_4 = arith.constant 0 : index
    %4 = vector.load %arg3[%c0_3, %c0_4] : memref<1x128xf32, #tpu.memory_space<vmem>>, vector<1x128xf32>
    %5 = vector.broadcast %4 : vector<1x128xf32> to vector<16x128xf32>
    %6 = arith.addf %3, %5 : vector<16x128xf32>
    %7 = arith.truncf %6 : vector<16x128xf32> to vector<16x128xbf16>
    %c0_5 = arith.constant 0 : index
    %c0_6 = arith.constant 0 : index
    %8 = vector.load %arg4[%c0_5, %c0_6] : memref<16x128xbf16, #tpu.memory_space<vmem>>, vector<16x128xbf16>
    tpu.vector_store %arg4[%c0_5, %c0_6], %7 {strides = array<i32>} : memref<16x128xbf16, #tpu.memory_space<vmem>>, vector<16x128xbf16>,
    return
  }
  func.func @transform_0(%arg0: i32) -> (i32, i32) {
    %c0_i32 = arith.constant 0 : i32
    %c0_i32_0 = arith.constant 0 : i32
    return %arg0, %c0_i32 : i32, i32
  }
  func.func @transform_1(%arg0: i32) -> (i32, i32) {
    %c0_i32 = arith.constant 0 : i32
    %c0_i32_0 = arith.constant 0 : i32
    %c0_i32_1 = arith.constant 0 : i32
    return %c0_i32, %c0_i32_0 : i32, i32
  }
  func.func @transform_2(%arg0: i32) -> (i32, i32) {
    %c0_i32 = arith.constant 0 : i32
    %c0_i32_0 = arith.constant 0 : i32
    %c0_i32_1 = arith.constant 0 : i32
    return %c0_i32, %c0_i32_0 : i32, i32
  }
  func.func @transform_3(%arg0: i32) -> (i32, i32) {
    %c0_i32 = arith.constant 0 : i32
    %c0_i32_0 = arith.constant 0 : i32
    return %arg0, %c0_i32 : i32, i32
  }
}

</mosaic_0001>

<bundles_post_ra>
// kernel: tpu_custom_call.1
= control target key start
LH: loop header
LB: loop body
LE: loop exit
PB: predicated region body
PF: predicated region fallthrough
CT: control target
= control target key end

     0   :  { %8 = vsyncpa [#allocation3], 0  ;;  %s441_s0 = inlined_call_operand.hbm [shape: f32[16,128], index: 0, kind: input, shape index: {}]   ;;  %s442_s1 = inlined_call_operand.hbm [shape: bf16[128,128], index: 1, kind: input, shape index: {}]   ;;  %s443_s2 = inlined_call_operand.hbm [shape: f32[1,128], index: 2, kind: input, shape index: {}]   ;;  %s444_s3 = inlined_call_operand.hbm [shape: bf16[16,128], index: 3, kind: output, shape index: {}]  }
   0x1   :  { %9 = vsyncpa [#allocation6], 0 }
   0x2   :  { %10 = vsyncpa [#allocation4], 0  ;;  %s357_s12 = smov [#allocation5]   ;;  %s263_s16 = scalar_lea.hbm %s442_s1, 1024 }
   0x3   :  { %s28_s13 = sshll.u32 %s357_s12, 4  ;;  %p264_p0 = scmp.ne.s32.totalorder %s442_s1, %s263_s16  ;;  %s29_s13 = int_to_ptr.vmem [resolvable:$true] %s28_s13 }
   0x4   :  { %p267_p1 = scmp.lt.u32.totalorder %s263_s16, %s442_s1 }
   0x6   :  { %p269_p2 = pnand %p267_p1, %p264_p0 }
   0x8   :  { %272 = shalt.err (!%p269_p2)
}
   0x9   :  { %s273_s21 = scalar_lea.vmem %s29_s13, 1024  ;;  %p278_p4 = scmp.lt.s32.totalorder %s29_s13, %s29_s13 }
   0xa   :  { %p274_p3 = scmp.ne.s32.totalorder %s29_s13, %s273_s21  ;;  %p279_p5 = scmp.lt.s32.totalorder %s273_s21, %s273_s21 }
   0xc   :  { %p280_p6 = por %p279_p5, %p278_p4 }
   0xe   :  { %p281_p7 = pnand %p280_p6, %p274_p3 }
  0x10   :  { %284 = shalt.err (!%p281_p7)
}
  0x11   :  { %s358_s22 = smov 64   ;;  %s359_s23 = smov 4  }
  0x12   :  { %34 = dma.hbm_to_vmem [thread:$0]  %s442_s1, 1024, %s29_s13, [#allocation6], %s358_s22, %s358_s22, %s359_s23  }
  0x13   :  { %s360_s26 = smov [#allocation2]   ;;  %s285_s30 = scalar_lea.hbm %s441_s0, 256 }
  0x14   :  { %s16_s27 = sshll.u32 %s360_s26, 4  ;;  %p286_p8 = scmp.ne.s32.totalorder %s441_s0, %s285_s30  ;;  %s17_s27 = int_to_ptr.vmem [resolvable:$true] %s16_s27 }
  0x15   :  { %p289_p9 = scmp.lt.u32.totalorder %s285_s30, %s441_s0 }
  0x17   :  { %p291_p10 = pnand %p289_p9, %p286_p8 }
  0x19   :  { %294 = shalt.err (!%p291_p10)
}
  0x1a   :  { %s295_s8 = scalar_lea.vmem %s17_s27, 256  ;;  %p300_p12 = scmp.lt.s32.totalorder %s17_s27, %s17_s27 }
  0x1b   :  { %p296_p11 = scmp.ne.s32.totalorder %s17_s27, %s295_s8  ;;  %p301_p13 = scmp.lt.s32.totalorder %s295_s8, %s295_s8 }
  0x1d   :  { %p302_p0 = por %p301_p13, %p300_p12 }
  0x1f   :  { %p303_p1 = pnand %p302_p0, %p296_p11 }
  0x21   :  { %306 = shalt.err (!%p303_p1)
}
  0x22   :  { %s361_s1 = smov 128   ;;  %s362_s9 = smov 8  }
  0x23   :  { %22 = dma.hbm_to_vmem [thread:$0]  %s441_s0, 256, %s17_s27, [#allocation3], %s361_s1, %s361_s1, %s362_s9  }
  0x24   :  { %s363_s12 = smov [#allocation7]   ;;  %s307_s16 = scalar_lea.hbm %s443_s2, 16 }
  0x25   :  { %s41_s13 = sshll.u32 %s363_s12, 4  ;;  %p308_p2 = scmp.ne.s32.totalorder %s443_s2, %s307_s16  ;;  %s42_s13 = int_to_ptr.vmem [resolvable:$true] %s41_s13 }
  0x26   :  { %p311_p3 = scmp.lt.u32.totalorder %s307_s16, %s443_s2 }
  0x28   :  { %p313_p4 = pnand %p311_p3, %p308_p2 }
  0x2a   :  { %316 = shalt.err (!%p313_p4)
}
  0x2b   :  { %s317_s21 = scalar_lea.vmem %s42_s13, 16  ;;  %s321_s0 = scalar_lea.vmem %s42_s13, 32 }
  0x2c   :  { %p318_p5 = scmp.ne.s32.totalorder %s42_s13, %s317_s21  ;;  %p322_p6 = scmp.lt.s32.totalorder %s42_s13, %s42_s13 }
  0x2d   :  { %p323_p7 = scmp.lt.s32.totalorder %s321_s0, %s317_s21 }
  0x2f   :  { %p324_p8 = por %p323_p7, %p322_p6 }
  0x31   :  { %p325_p9 = pnand %p324_p8, %p318_p5 }
  0x33   :  { %328 = shalt.err (!%p325_p9)
}
  0x34   :  { %44 = dma.hbm_to_vmem [thread:$0]  %s443_s2, 16, %s42_s13, [#allocation6]  }
  0x35   :  { %351 = dma.done.wait [#allocation3], 256  }
  0x36   :  { %352 = vsyncadd [#allocation3], 4294967040 }
  0x37   :  { %353 = dma.done.wait [#allocation6], 1040  }
  0x38   :  { %354 = vsyncadd [#allocation6], 4294966256  ;;  %v364_v0 = vmov 0.0   ;;  %vm365_vm0 = vmmov 0   ;;  %v255_v1 = vld [vmem:[#allocation5] sm:$0xff]   ;;  %v256_v2 = vld [vmem:[#allocation5 + $0x8] sm:$0xff]  }
  0x39   :  { %225 = vmatprep.subr.bf16.mxu0 %v364_v0  ;;  %241 = vmatprep.mubr.msk.bf16.mxu0 %vm365_vm0, %v364_v0  ;;  %v257_v3 = vld [vmem:[#allocation5 + $0x10] sm:$0xff]   ;;  %v258_v4 = vld [vmem:[#allocation5 + $0x18] sm:$0xff]   ;;  %v259_v5 = vld [vmem:[#allocation5 + $0x20] sm:$0xff]   ;;  %s366_s2 = smov [#allocation8]  }
  0x3a   :  { %226 = vmatpush3.bf16.msra.mxu0 %v255_v1  ;;  %v260_v6 = vld [vmem:[#allocation5 + $0x28] sm:$0xff]   ;;  %v261_v7 = vld [vmem:[#allocation5 + $0x30] sm:$0xff]   ;;  %v262_v8 = vld [vmem:[#allocation5 + $0x38] sm:$0xff]   ;;  %s185_s26 = sshll.u32 %s366_s2, 4  ;;  %s186_s26 = int_to_ptr.vmem [resolvable:$true] %s185_s26 }
  0x3b   :  { %227 = vmatprep.subr.bf16.mxu0 %v364_v0  ;;  %v55_v9 = vld [vmem:[#allocation2] sm:$0xff]  ;;  %v56_v10 = vld [vmem:[#allocation2 + $0x8] sm:$0xff]  ;;  %v198_v12 = vld [vmem:[#allocation7] ss:$0 sm:$0xff]  ;;  %s329_s27 = scalar_lea.vmem %s186_s26, 128  ;;  %p334_p11 = scmp.lt.s32.totalorder %s186_s26, %s186_s26 }
  0x3c   :  { %v57_v11 = vpack.c.bf16 %v56_v10, %v55_v9  ;;  %p330_p10 = scmp.ne.s32.totalorder %s186_s26, %s329_s27  ;;  %p335_p12 = scmp.lt.s32.totalorder %s329_s27, %s329_s27 }
  0x3e   :  { %228 = vmatpush3.bf16.msra.mxu0 %v256_v2  ;;  %p336_p13 = por %p335_p12, %p334_p11 }
  0x3f   :  { %229 = vmatprep.subr.bf16.mxu0 %v364_v0 }
  0x40   :  { %p337_p0 = pnand %p336_p13, %p330_p10 }
  0x42   :  { %230 = vmatpush3.bf16.msra.mxu0 %v257_v3 }
  0x43   :  { %231 = vmatprep.subr.bf16.mxu0 %v364_v0 }
  0x46   :  { %232 = vmatpush3.bf16.msra.mxu0 %v258_v4 }
  0x47   :  { %233 = vmatprep.subr.bf16.mxu0 %v364_v0 }
  0x4a   :  { %234 = vmatpush3.bf16.msra.mxu0 %v259_v5 }
  0x4b   :  { %235 = vmatprep.subr.bf16.mxu0 %v364_v0 }
  0x4e   :  { %236 = vmatpush3.bf16.msra.mxu0 %v260_v6 }
  0x4f   :  { %237 = vmatprep.subr.bf16.mxu0 %v364_v0 }
  0x52   :  { %238 = vmatpush3.bf16.msra.mxu0 %v261_v7 }
  0x53   :  { %239 = vmatprep.subr.bf16.mxu0 %v364_v0 }
  0x56   :  { %240 = vmatpush3.bf16.msra.mxu0 %v262_v8 }
  0x59   :  { %242 = vmatmul.mubr.bf16.vlgmr.msra.gmra.mrb[0].mxu0 %v57_v11 }
 0x12c   :  { %v163_v13 = vpop.f32.mrb[0].mxu0 }
 0x12d   :  { %v243_v14 = vpop.f32.mrb[1].mxu0  ;;  %v164_v16 = vadd.f32 %v198_v12, %v163_v13 }
 0x12e   :  { %v166_v15 = vpop.f32.mrb[2].mxu0 }
 0x12f   :  { %v167_v17 = vadd.f32 %v198_v12, %v166_v15  ;;  %v244_v18 = vpop.f32.mrb[3].mxu0 }
 0x131   :  { %v214_v19 = vpack.c.bf16 %v167_v17, %v164_v16 }
 0x133   :  { %215 = vst [vmem:[#allocation8] sm:$0xff] %v214_v19  }
 0x134   :  { %340 = shalt.err (!%p337_p0)
}
 0x135   :  { %s341_s30 = scalar_lea.hbm %s444_s3, 128 }
 0x136   :  { %p342_p1 = scmp.ne.s32.totalorder %s444_s3, %s341_s30  ;;  %p345_p2 = scmp.lt.u32.totalorder %s341_s30, %s444_s3 }
 0x138   :  { %p347_p3 = pnand %p345_p2, %p342_p1 }
 0x13a   :  { %350 = shalt.err (!%p347_p3)
}
 0x13b   :  { %191 = dma.vmem_to_hbm [thread:$0]  %s186_s26, 128, %s444_s3, [#allocation4], %s358_s22, %s358_s22, %s359_s23  }
 0x13c   :  { %355 = dma.done.wait [#allocation4], 128  }
 0x13d   :  { %356 = vsyncadd [#allocation4], 4294967168 }
 0x13e   :  { %195 = vsyncpa [#allocation3], 1 }
 0x13f   :  { %196 = vsyncpa [#allocation6], 1 }
 0x140   :  { %197 = vsyncpa [#allocation4], 1 }

</bundles_post_ra>
